<compile_context>
chip_gen: v7x
topology: tpu7x:2x2x1
jax: 0.10.0
libtpu: 0.0.40
codegen_flags: <defaults>
</compile_context>

<pallas_src>
import jax
import jax.numpy as jnp
from jax.experimental import pallas as pl
from jax.experimental.pallas import tpu as pltpu


# ---------------------------------------------------------------------------
# Kernel: fused 3-layer ReLU MLP backend + task head; all matmuls on the MXU.
# ---------------------------------------------------------------------------
def _hard_shared_kernel(x_ref, w1_ref, b1_ref, w2_ref, b2_ref,
                        w3_ref, b3_ref, wh_ref, bh_ref, o_ref):
    # Feature arrives f32; cast to bf16 right before the MXU (free VPU work).
    x = x_ref[...].astype(jnp.bfloat16)
    h = jnp.dot(x, w1_ref[...], preferred_element_type=jnp.float32) + b1_ref[...]
    h = jnp.maximum(h, 0.0)
    h = jnp.dot(h.astype(jnp.bfloat16), w2_ref[...],
                preferred_element_type=jnp.float32) + b2_ref[...]
    h = jnp.maximum(h, 0.0)
    h = jnp.dot(h.astype(jnp.bfloat16), w3_ref[...],
                preferred_element_type=jnp.float32) + b3_ref[...]
    h = jnp.maximum(h, 0.0)
    o_ref[...] = (jnp.dot(h.astype(jnp.bfloat16), wh_ref[...],
                          preferred_element_type=jnp.float32)
                  + bh_ref[...]).astype(o_ref.dtype)


# ---------------------------------------------------------------------------
# Helpers
# ---------------------------------------------------------------------------
def _round_up(x, m):
    return m * ((x + m - 1) // m)


def _is_two_core_chip():
    """True when the default device looks like a v7x-class (2 TensorCores)."""
    try:
        kind = jax.devices()[0].device_kind.lower()
    except Exception:
        return False
    return "v7" in kind or "7x" in kind


def _choose_tile_b(B, two_cores):
    """Batch tile: multiple of 16 (f32 load + bf16 intermediates pack cleanly);
    large single-TC tiles amortize per-step overhead; >=2 tiles on v7x."""
    if B < 16:
        return _round_up(B, 8)          # f32 native sublane tile is (8, 128)
    if two_cores and B >= 32:
        # keep >=2 grid steps so both v7x TensorCores get work
        return min(256, _round_up((B + 1) // 2, 16))
    # single TensorCore (v5e/v6e): biggest tile -> fewest per-step overheads
    return min(512, _round_up(B, 16))


_WEIGHTS_SINGLE_BUFFER = None


def _single_buffer_weights_supported():
    """One-time probe: does this jax/Mosaic accept pipeline_mode=pl.Buffered(1)?
    Falls back to default double-buffering if not (correctness unaffected)."""
    global _WEIGHTS_SINGLE_BUFFER
    if _WEIGHTS_SINGLE_BUFFER is not None:
        return _WEIGHTS_SINGLE_BUFFER
    try:
        def _copy(x_ref, o_ref):
            o_ref[...] = x_ref[...]
        out = pl.pallas_call(
            _copy,
            out_shape=jax.ShapeDtypeStruct((8, 128), jnp.float32),
            grid=(1,),
            in_specs=[pl.BlockSpec((8, 128), lambda i: (0, 0),
                                   pipeline_mode=pl.Buffered(1))],
            out_specs=pl.BlockSpec((8, 128), lambda i: (0, 0)),
        )(jnp.zeros((8, 128), jnp.float32))
        jax.block_until_ready(out)
        _WEIGHTS_SINGLE_BUFFER = True
    except Exception:
        _WEIGHTS_SINGLE_BUFFER = False
    return _WEIGHTS_SINGLE_BUFFER


# ---------------------------------------------------------------------------
# One-time parameter preparation (hoisted out of the per-call path).
# ---------------------------------------------------------------------------
def prepare_params(params):
    """bf16 weights for the MXU, f32 biases, per-task head zero-padded to a
    lane-dense (multiple-of-128) class dimension.  Call once, reuse forever."""
    prepped = {
        "w1": params["w1"].astype(jnp.bfloat16),
        "b1": params["b1"].astype(jnp.float32),
        "w2": params["w2"].astype(jnp.bfloat16),
        "b2": params["b2"].astype(jnp.float32),
        "w3": params["w3"].astype(jnp.bfloat16),
        "b3": params["b3"].astype(jnp.float32),
        "heads": [],
        "head_classes": [],
    }
    for wh, bh in params["heads"]:
        C = wh.shape[1]
        Cp = _round_up(C, 128)
        wh_p = jnp.pad(wh, ((0, 0), (0, Cp - C))).astype(jnp.bfloat16)
        bh_p = jnp.pad(bh, ((0, 0), (0, Cp - C))).astype(jnp.float32)
        prepped["heads"].append((wh_p, bh_p))
        prepped["head_classes"].append(C)
    return prepped


# ---------------------------------------------------------------------------
# Forward wrapper
# ---------------------------------------------------------------------------
def hard_shared_forward(feature, prepped, task_id, *, tile_b=None,
                        out_dtype=jnp.float32):
    """HardSharedModel.forward(feature, taskID) via a fused Pallas kernel.

    feature: (B, 1152) float32 — passed to the kernel as-is (no pad/cast pass).
    prepped: output of prepare_params() (bf16 weights, padded heads).
    task_id: Python int (static), selects the head like `self.nets[taskID]`.
    out_dtype: jnp.float32 (default, matches PyTorch) or jnp.bfloat16 to halve
               the output writeback if downstream tolerates bf16 logits.
    """
    B, D_in = feature.shape
    w1, b1 = prepped["w1"], prepped["b1"]
    w2, b2 = prepped["w2"], prepped["b2"]
    w3, b3 = prepped["w3"], prepped["b3"]
    wh, bh = prepped["heads"][task_id]
    C = prepped["head_classes"][task_id]
    H = w1.shape[1]
    Cp = wh.shape[1]

    two_cores = _is_two_core_chip()
    if tile_b is None:
        tile_b = _choose_tile_b(B, two_cores)
    assert tile_b % 8 == 0, "tile_b must be a multiple of 8"
    grid = (pl.cdiv(B, tile_b),)     # ragged tail handled by Pallas pad/mask

    single_buf = _single_buffer_weights_supported()

    def _resident(shape):
        # Constant index_map across the grid -> resident weight/bias block.
        if single_buf:
            return pl.BlockSpec(shape, lambda i: (0, 0),
                                pipeline_mode=pl.Buffered(1))
        return pl.BlockSpec(shape, lambda i: (0, 0))

    # --- VMEM budget: real footprint + 25% headroom, capped well below 64 MiB.
    out_bytes = jnp.dtype(out_dtype).itemsize
    w_buf = 1 if single_buf else 2
    footprint = (2 * tile_b * D_in * 4                        # x (f32, 2 bufs)
                 + w_buf * (D_in * H + 2 * H * H + H * Cp) * 2  # bf16 weights
                 + w_buf * (3 * H + Cp) * 4                     # f32 biases
                 + 2 * tile_b * Cp * out_bytes)                 # out (2 bufs)
    vmem_limit = int(min(48 << 20, max(16 << 20, int(footprint * 1.25))))

    flops = 2 * B * (D_in * H + 2 * H * H + H * Cp)
    bytes_accessed = (B * D_in * 4
                      + (D_in * H + 2 * H * H + H * Cp) * 2
                      + (3 * H + Cp) * 4
                      + B * Cp * out_bytes)
    cost = pl.CostEstimate(flops=flops, transcendentals=0,
                           bytes_accessed=bytes_accessed)

    # v7x: actually split the batch grid across both TensorCores.
    if two_cores and grid[0] >= 2 and hasattr(pltpu, "CORE_PARALLEL"):
        dim_sem = (pltpu.CORE_PARALLEL,)
    else:
        dim_sem = ("parallel",)

    out = pl.pallas_call(
        _hard_shared_kernel,
        out_shape=jax.ShapeDtypeStruct((B, Cp), out_dtype),
        grid_spec=pltpu.PrefetchScalarGridSpec(
            num_scalar_prefetch=0,
            grid=grid,
            in_specs=[
                pl.BlockSpec((tile_b, D_in), lambda i: (i, 0)),  # x tile (f32)
                _resident((D_in, H)),    # W1 (bf16)
                _resident((1, H)),       # b1
                _resident((H, H)),       # W2
                _resident((1, H)),       # b2
                _resident((H, H)),       # W3
                _resident((1, H)),       # b3
                _resident((H, Cp)),      # W_head (bf16, lane-dense padded)
                _resident((1, Cp)),      # b_head
            ],
            out_specs=pl.BlockSpec((tile_b, Cp), lambda i: (i, 0)),
        ),
        compiler_params=pltpu.CompilerParams(
            dimension_semantics=dim_sem,
            vmem_limit_bytes=vmem_limit),
        cost_estimate=cost,
    )(feature, w1, b1, w2, b2, w3, b3, wh, bh)

    return out[:, :C]


# ---------------------------------------------------------------------------
# Deterministic parameter init (PyTorch nn.Linear-style uniform bounds).
# ---------------------------------------------------------------------------
def init_params(key, hidden_feature, task_classes, in_features=1152):
    def linear(key, fan_in, fan_out):
        kw, kb = jax.random.split(key)
        bound = 1.0 / jnp.sqrt(jnp.float32(fan_in))
        w = jax.random.uniform(kw, (fan_in, fan_out), jnp.float32, -bound, bound)
        b = jax.random.uniform(kb, (1, fan_out), jnp.float32, -bound, bound)
        return w, b

    keys = jax.random.split(key, 3 + len(task_classes))
    w1, b1 = linear(keys[0], in_features, hidden_feature)
    w2, b2 = linear(keys[1], hidden_feature, hidden_feature)
    w3, b3 = linear(keys[2], hidden_feature, hidden_feature)
    heads = []
    for d, c in enumerate(task_classes):
        heads.append(linear(keys[3 + d], hidden_feature, c))
    return {"w1": w1, "b1": b1, "w2": w2, "b2": b2, "w3": w3, "b3": b3,
            "heads": heads}


def reference_forward(feature, params, task_id):
    h = jnp.maximum(feature @ params["w1"] + params["b1"], 0.0)
    h = jnp.maximum(h @ params["w2"] + params["b2"], 0.0)
    h = jnp.maximum(h @ params["w3"] + params["b3"], 0.0)
    wh, bh = params["heads"][task_id]
    return h @ wh + bh


if __name__ == "__main__":
    key = jax.random.PRNGKey(0)
    k_param, k_x1, k_x2 = jax.random.split(key, 3)

    IN = 1152                 # fixed by the module (nn.Linear(1152, ...))
    HIDDEN = 128              # hidden_feature
    TASK_CLASSES = [16, 32]   # task_classes

    params = init_params(k_param, HIDDEN, TASK_CLASSES, in_features=IN)
    prepped = prepare_params(params)   # one-time weight prep (bf16 cast + pad)

    # Test 1: small aligned batch, task 1.
    B1 = 8
    feat1 = jax.random.normal(k_x1, (B1, IN), jnp.float32)
    out1 = jax.block_until_ready(hard_shared_forward(feat1, prepped, 1))
    ref1 = reference_forward(feat1, params, 1)
    assert out1.shape == (B1, TASK_CLASSES[1])
    # bf16 weights/activations (f32 accumulate) -> loosened tolerance vs f32 ref.
    assert jnp.allclose(out1, ref1, atol=3e-2, rtol=3e-2), (
        float(jnp.max(jnp.abs(out1 - ref1))))

    # Test 2: ragged batch (batch not a tile multiple -> Pallas pad/mask path), task 0.
    B2 = 20
    feat2 = jax.random.normal(k_x2, (B2, IN), jnp.float32)
    out2 = jax.block_until_ready(hard_shared_forward(feat2, prepped, 0))
    ref2 = reference_forward(feat2, params, 0)
    assert out2.shape == (B2, TASK_CLASSES[0])
    assert jnp.allclose(out2, ref2, atol=3e-2, rtol=3e-2), (
        float(jnp.max(jnp.abs(out2 - ref2))))

    print("KERNEL_OK")
</pallas_src>

<mosaic_0001>
module attributes {stable_mosaic.version = 11 : i64} {
  func.func @_copy(%arg0: i32, %arg1: memref<8x128xf32, #tpu.memory_space<vmem>>, %arg2: memref<8x128xf32, #tpu.memory_space<vmem>>) attributes {dimension_semantics = [#tpu.dimension_semantics<arbitrary>], iteration_bounds = array<i64: 1>, scalar_prefetch = 0 : i64, scratch_operands = 0 : i64, tpu.core_type = #tpu.core_type<tc>, window_params = [{pipeline_mode = #tpu.pipeline_mode<synchronous>, transform_indices = @transform_0, window_bounds = array<i64: 8, 128>}, {pipeline_mode = #tpu.pipeline_mode<synchronous>, transform_indices = @transform_1, window_bounds = array<i64: 8, 128>}]} {
    %c0 = arith.constant 0 : index
    %c0_0 = arith.constant 0 : index
    %0 = vector.load %arg1[%c0, %c0_0] : memref<8x128xf32, #tpu.memory_space<vmem>>, vector<8x128xf32>
    %c0_1 = arith.constant 0 : index
    %c0_2 = arith.constant 0 : index
    %1 = vector.load %arg2[%c0_1, %c0_2] : memref<8x128xf32, #tpu.memory_space<vmem>>, vector<8x128xf32>
    tpu.vector_store %arg2[%c0_1, %c0_2], %0 {strides = array<i32>} : memref<8x128xf32, #tpu.memory_space<vmem>>, vector<8x128xf32>,
    return
  }
  func.func @transform_0(%arg0: i32) -> (i32, i32) {
    %c0_i32 = arith.constant 0 : i32
    %c0_i32_0 = arith.constant 0 : i32
    %c0_i32_1 = arith.constant 0 : i32
    return %c0_i32, %c0_i32_0 : i32, i32
  }
  func.func @transform_1(%arg0: i32) -> (i32, i32) {
    %c0_i32 = arith.constant 0 : i32
    %c0_i32_0 = arith.constant 0 : i32
    %c0_i32_1 = arith.constant 0 : i32
    return %c0_i32, %c0_i32_0 : i32, i32
  }
}

module attributes {stable_mosaic.version = 11 : i64} {
  func.func @_hard_shared_kernel(%arg0: i32, %arg1: memref<8x1152xf32, #tpu.memory_space<vmem>>, %arg2: memref<1152x128xbf16, #tpu.memory_space<vmem>>, %arg3: memref<1x128xf32, #tpu.memory_space<vmem>>, %arg4: memref<128x128xbf16, #tpu.memory_space<vmem>>, %arg5: memref<1x128xf32, #tpu.memory_space<vmem>>, %arg6: memref<128x128xbf16, #tpu.memory_space<vmem>>, %arg7: memref<1x128xf32, #tpu.memory_space<vmem>>, %arg8: memref<128x128xbf16, #tpu.memory_space<vmem>>, %arg9: memref<1x128xf32, #tpu.memory_space<vmem>>, %arg10: memref<8x128xf32, #tpu.memory_space<vmem>>) attributes {dimension_semantics = [#tpu.dimension_semantics<parallel>], iteration_bounds = array<i64: 1>, scalar_prefetch = 0 : i64, scratch_operands = 0 : i64, tpu.core_type = #tpu.core_type<tc>, window_params = [{transform_indices = @transform_0, window_bounds = array<i64: 8, 1152>}, {pipeline_mode = #tpu.pipeline_mode<synchronous>, transform_indices = @transform_1, window_bounds = array<i64: 1152, 128>}, {pipeline_mode = #tpu.pipeline_mode<synchronous>, transform_indices = @transform_2, window_bounds = array<i64: 1, 128>}, {pipeline_mode = #tpu.pipeline_mode<synchronous>, transform_indices = @transform_3, window_bounds = array<i64: 128, 128>}, {pipeline_mode = #tpu.pipeline_mode<synchronous>, transform_indices = @transform_4, window_bounds = array<i64: 1, 128>}, {pipeline_mode = #tpu.pipeline_mode<synchronous>, transform_indices = @transform_5, window_bounds = array<i64: 128, 128>}, {pipeline_mode = #tpu.pipeline_mode<synchronous>, transform_indices = @transform_6, window_bounds = array<i64: 1, 128>}, {pipeline_mode = #tpu.pipeline_mode<synchronous>, transform_indices = @transform_7, window_bounds = array<i64: 128, 128>}, {pipeline_mode = #tpu.pipeline_mode<synchronous>, transform_indices = @transform_8, window_bounds = array<i64: 1, 128>}, {transform_indices = @transform_9, window_bounds = array<i64: 8, 128>}]} {
    %c0 = arith.constant 0 : index
    %c0_0 = arith.constant 0 : index
    %0 = vector.load %arg1[%c0, %c0_0] : memref<8x1152xf32, #tpu.memory_space<vmem>>, vector<8x1152xf32>
    %1 = arith.truncf %0 : vector<8x1152xf32> to vector<8x1152xbf16>
    %c0_1 = arith.constant 0 : index
    %c0_2 = arith.constant 0 : index
    %2 = vector.load %arg2[%c0_1, %c0_2] : memref<1152x128xbf16, #tpu.memory_space<vmem>>, vector<1152x128xbf16>
    %cst = arith.constant dense<0.000000e+00> : vector<8x128xf32>
    %3 = tpu.matmul %1, %2, %cst {dimension_numbers = #tpu.dot_dimension_numbers<[1], [0], [0], [1], [0, 0, 1, 1], [], []>} : vector<8x1152xbf16>, vector<1152x128xbf16>, vector<8x128xf32> -> vector<8x128xf32>
    %c0_3 = arith.constant 0 : index
    %c0_4 = arith.constant 0 : index
    %4 = vector.load %arg3[%c0_3, %c0_4] : memref<1x128xf32, #tpu.memory_space<vmem>>, vector<1x128xf32>
    %5 = vector.broadcast %4 : vector<1x128xf32> to vector<8x128xf32>
    %6 = arith.addf %3, %5 : vector<8x128xf32>
    %cst_5 = arith.constant 0.000000e+00 : f32
    %7 = vector.broadcast %cst_5 : f32 to vector<8x128xf32>
    %8 = arith.maximumf %6, %7 : vector<8x128xf32>
    %9 = arith.truncf %8 : vector<8x128xf32> to vector<8x128xbf16>
    %c0_6 = arith.constant 0 : index
    %c0_7 = arith.constant 0 : index
    %10 = vector.load %arg4[%c0_6, %c0_7] : memref<128x128xbf16, #tpu.memory_space<vmem>>, vector<128x128xbf16>
    %cst_8 = arith.constant dense<0.000000e+00> : vector<8x128xf32>
    %11 = tpu.matmul %9, %10, %cst_8 {dimension_numbers = #tpu.dot_dimension_numbers<[1], [0], [0], [1], [0, 0, 1, 1], [], []>} : vector<8x128xbf16>, vector<128x128xbf16>, vector<8x128xf32> -> vector<8x128xf32>
    %c0_9 = arith.constant 0 : index
    %c0_10 = arith.constant 0 : index
    %12 = vector.load %arg5[%c0_9, %c0_10] : memref<1x128xf32, #tpu.memory_space<vmem>>, vector<1x128xf32>
    %13 = vector.broadcast %12 : vector<1x128xf32> to vector<8x128xf32>
    %14 = arith.addf %11, %13 : vector<8x128xf32>
    %cst_11 = arith.constant 0.000000e+00 : f32
    %15 = vector.broadcast %cst_11 : f32 to vector<8x128xf32>
    %16 = arith.maximumf %14, %15 : vector<8x128xf32>
    %17 = arith.truncf %16 : vector<8x128xf32> to vector<8x128xbf16>
    %c0_12 = arith.constant 0 : index
    %c0_13 = arith.constant 0 : index
    %18 = vector.load %arg6[%c0_12, %c0_13] : memref<128x128xbf16, #tpu.memory_space<vmem>>, vector<128x128xbf16>
    %cst_14 = arith.constant dense<0.000000e+00> : vector<8x128xf32>
    %19 = tpu.matmul %17, %18, %cst_14 {dimension_numbers = #tpu.dot_dimension_numbers<[1], [0], [0], [1], [0, 0, 1, 1], [], []>} : vector<8x128xbf16>, vector<128x128xbf16>, vector<8x128xf32> -> vector<8x128xf32>
    %c0_15 = arith.constant 0 : index
    %c0_16 = arith.constant 0 : index
    %20 = vector.load %arg7[%c0_15, %c0_16] : memref<1x128xf32, #tpu.memory_space<vmem>>, vector<1x128xf32>
    %21 = vector.broadcast %20 : vector<1x128xf32> to vector<8x128xf32>
    %22 = arith.addf %19, %21 : vector<8x128xf32>
    %cst_17 = arith.constant 0.000000e+00 : f32
    %23 = vector.broadcast %cst_17 : f32 to vector<8x128xf32>
    %24 = arith.maximumf %22, %23 : vector<8x128xf32>
    %25 = arith.truncf %24 : vector<8x128xf32> to vector<8x128xbf16>
    %c0_18 = arith.constant 0 : index
    %c0_19 = arith.constant 0 : index
    %26 = vector.load %arg8[%c0_18, %c0_19] : memref<128x128xbf16, #tpu.memory_space<vmem>>, vector<128x128xbf16>
    %cst_20 = arith.constant dense<0.000000e+00> : vector<8x128xf32>
    %27 = tpu.matmul %25, %26, %cst_20 {dimension_numbers = #tpu.dot_dimension_numbers<[1], [0], [0], [1], [0, 0, 1, 1], [], []>} : vector<8x128xbf16>, vector<128x128xbf16>, vector<8x128xf32> -> vector<8x128xf32>
    %c0_21 = arith.constant 0 : index
    %c0_22 = arith.constant 0 : index
    %28 = vector.load %arg9[%c0_21, %c0_22] : memref<1x128xf32, #tpu.memory_space<vmem>>, vector<1x128xf32>
    %29 = vector.broadcast %28 : vector<1x128xf32> to vector<8x128xf32>
    %30 = arith.addf %27, %29 : vector<8x128xf32>
    %c0_23 = arith.constant 0 : index
    %c0_24 = arith.constant 0 : index
    %31 = vector.load %arg10[%c0_23, %c0_24] : memref<8x128xf32, #tpu.memory_space<vmem>>, vector<8x128xf32>
    tpu.vector_store %arg10[%c0_23, %c0_24], %30 {strides = array<i32>} : memref<8x128xf32, #tpu.memory_space<vmem>>, vector<8x128xf32>,
    return
  }
  func.func @transform_0(%arg0: i32) -> (i32, i32) {
    %c0_i32 = arith.constant 0 : i32
    %c0_i32_0 = arith.constant 0 : i32
    return %arg0, %c0_i32 : i32, i32
  }
  func.func @transform_1(%arg0: i32) -> (i32, i32) {
    %c0_i32 = arith.constant 0 : i32
    %c0_i32_0 = arith.constant 0 : i32
    %c0_i32_1 = arith.constant 0 : i32
    return %c0_i32, %c0_i32_0 : i32, i32
  }
  func.func @transform_2(%arg0: i32) -> (i32, i32) {
    %c0_i32 = arith.constant 0 : i32
    %c0_i32_0 = arith.constant 0 : i32
    %c0_i32_1 = arith.constant 0 : i32
    return %c0_i32, %c0_i32_0 : i32, i32
  }
  func.func @transform_3(%arg0: i32) -> (i32, i32) {
    %c0_i32 = arith.constant 0 : i32
    %c0_i32_0 = arith.constant 0 : i32
    %c0_i32_1 = arith.constant 0 : i32
    return %c0_i32, %c0_i32_0 : i32, i32
  }
  func.func @transform_4(%arg0: i32) -> (i32, i32) {
    %c0_i32 = arith.constant 0 : i32
    %c0_i32_0 = arith.constant 0 : i32
    %c0_i32_1 = arith.constant 0 : i32
    return %c0_i32, %c0_i32_0 : i32, i32
  }
  func.func @transform_5(%arg0: i32) -> (i32, i32) {
    %c0_i32 = arith.constant 0 : i32
    %c0_i32_0 = arith.constant 0 : i32
    %c0_i32_1 = arith.constant 0 : i32
    return %c0_i32, %c0_i32_0 : i32, i32
  }
  func.func @transform_6(%arg0: i32) -> (i32, i32) {
    %c0_i32 = arith.constant 0 : i32
    %c0_i32_0 = arith.constant 0 : i32
    %c0_i32_1 = arith.constant 0 : i32
    return %c0_i32, %c0_i32_0 : i32, i32
  }
  func.func @transform_7(%arg0: i32) -> (i32, i32) {
    %c0_i32 = arith.constant 0 : i32
    %c0_i32_0 = arith.constant 0 : i32
    %c0_i32_1 = arith.constant 0 : i32
    return %c0_i32, %c0_i32_0 : i32, i32
  }
  func.func @transform_8(%arg0: i32) -> (i32, i32) {
    %c0_i32 = arith.constant 0 : i32
    %c0_i32_0 = arith.constant 0 : i32
    %c0_i32_1 = arith.constant 0 : i32
    return %c0_i32, %c0_i32_0 : i32, i32
  }
  func.func @transform_9(%arg0: i32) -> (i32, i32) {
    %c0_i32 = arith.constant 0 : i32
    %c0_i32_0 = arith.constant 0 : i32
    return %arg0, %c0_i32 : i32, i32
  }
}

</mosaic_0001>

<bundles_post_ra>
// kernel: tpu_custom_call.1
= control target key start
LH: loop header
LB: loop body
LE: loop exit
PB: predicated region body
PF: predicated region fallthrough
CT: control target
= control target key end

     0   :  { %6 = vsyncpa [#allocation3], 0  ;;  %s124_s0 = inlined_call_operand.hbm [shape: f32[8,128], index: 0, kind: input, shape index: {}]   ;;  %s125_s1 = inlined_call_operand.hbm [shape: f32[8,128], index: 1, kind: output, shape index: {}]  }
   0x1   :  { %7 = vsyncpa [#allocation4], 0  ;;  %s88_s6 = smov [#allocation2]   ;;  %s40_s10 = scalar_lea.hbm %s124_s0, 128 }
   0x2   :  { %s14_s7 = sshll.u32 %s88_s6, 4  ;;  %p41_p0 = scmp.ne.s32.totalorder %s124_s0, %s40_s10  ;;  %s15_s7 = int_to_ptr.vmem [resolvable:$true] %s14_s7 }
   0x3   :  { %p44_p1 = scmp.lt.u32.totalorder %s40_s10, %s124_s0 }
   0x5   :  { %p46_p2 = pnand %p44_p1, %p41_p0 }
   0x7   :  { %49 = shalt.err (!%p46_p2)
}
   0x8   :  { %s50_s15 = scalar_lea.vmem %s15_s7, 128  ;;  %p55_p4 = scmp.lt.s32.totalorder %s15_s7, %s15_s7 }
   0x9   :  { %p51_p3 = scmp.ne.s32.totalorder %s15_s7, %s50_s15  ;;  %p56_p5 = scmp.lt.s32.totalorder %s50_s15, %s50_s15 }
   0xb   :  { %p57_p6 = por %p56_p5, %p55_p4 }
   0xd   :  { %p58_p7 = pnand %p57_p6, %p51_p3 }
   0xf   :  { %61 = shalt.err (!%p58_p7)
}
  0x10   :  { %17 = dma.hbm_to_vmem [thread:$0]  %s124_s0, 128, %s15_s7, [#allocation3]  }
  0x11   :  { %84 = dma.done.wait [#allocation3], 128  }
  0x12   :  { %85 = vsyncadd [#allocation3], 4294967168  ;;  %s89_s18 = smov [#allocation5]   ;;  %v21_v0 = vld [vmem:[#allocation2] sm:$0xff] }
  0x13   :  { %s29_s19 = sshll.u32 %s89_s18, 4  ;;  %22 = vst [vmem:[#allocation5] sm:$0xff] %v21_v0  ;;  %s30_s19 = int_to_ptr.vmem [resolvable:$true] %s29_s19 }
  0x14   :  { %s62_s20 = scalar_lea.vmem %s30_s19, 128  ;;  %p67_p9 = scmp.lt.s32.totalorder %s30_s19, %s30_s19 }
  0x15   :  { %p63_p8 = scmp.ne.s32.totalorder %s30_s19, %s62_s20  ;;  %p68_p10 = scmp.lt.s32.totalorder %s62_s20, %s62_s20 }
  0x17   :  { %p69_p11 = por %p68_p10, %p67_p9 }
  0x19   :  { %p70_p12 = pnand %p69_p11, %p63_p8 }
  0x1b   :  { %73 = shalt.err (!%p70_p12)
}
  0x1c   :  { %s74_s23 = scalar_lea.hbm %s125_s1, 128 }
  0x1d   :  { %p75_p13 = scmp.ne.s32.totalorder %s125_s1, %s74_s23  ;;  %p78_p0 = scmp.lt.u32.totalorder %s74_s23, %s125_s1 }
  0x1f   :  { %p80_p1 = pnand %p78_p0, %p75_p13 }
  0x21   :  { %83 = shalt.err (!%p80_p1)
}
  0x22   :  { %32 = dma.vmem_to_hbm [thread:$0]  %s30_s19, 128, %s125_s1, [#allocation4]  }
  0x23   :  { %86 = dma.done.wait [#allocation4], 128  }
  0x24   :  { %87 = vsyncadd [#allocation4], 4294967168 }
  0x25   :  { %36 = vsyncpa [#allocation3], 1 }
  0x26   :  { %37 = vsyncpa [#allocation4], 1 }

// kernel: tpu_custom_call.1
= control target key start
LH: loop header
LB: loop body
LE: loop exit
PB: predicated region body
PF: predicated region fallthrough
CT: control target
= control target key end

     0   :  { %14 = vsyncpa [#allocation3], 0  ;;  %s2004_s0 = inlined_call_operand.hbm [shape: f32[8,1152], index: 0, kind: input, shape index: {}]   ;;  %s2005_s1 = inlined_call_operand.hbm [shape: bf16[1152,128], index: 1, kind: input, shape index: {}]   ;;  %s2006_s2 = inlined_call_operand.vmem [shape: f32[1,128], index: 2, kind: input, shape index: {}]   ;;  %s2007_s3 = inlined_call_operand.hbm [shape: bf16[128,128], index: 3, kind: input, shape index: {}]   ;;  %s2008_s4 = inlined_call_operand.vmem [shape: f32[1,128], index: 4, kind: input, shape index: {}]   ;;  %s2009_s5 = inlined_call_operand.hbm [shape: bf16[128,128], index: 5, kind: input, shape index: {}]   ;;  %s2010_s6 = inlined_call_operand.vmem [shape: f32[1,128], index: 6, kind: input, shape index: {}]   ;;  %s2011_s7 = inlined_call_operand.hbm [shape: bf16[128,128], index: 7, kind: input, shape index: {}]   ;;  %s2012_s8 = inlined_call_operand.vmem [shape: f32[1,128], index: 8, kind: input, shape index: {}]   ;;  %s2013_s9 = inlined_call_operand.hbm [shape: f32[8,128], index: 9, kind: output, shape index: {}]  }
   0x1   :  { %15 = vsyncpa [#allocation6], 0 }
   0x2   :  { %16 = vsyncpa [#allocation9], 0 }
   0x3   :  { %17 = vsyncpa [#allocation4], 0  ;;  %s1808_s30 = smov [#allocation5]   ;;  %s1668_s13 = scalar_lea.hbm %s2005_s1, 9216 }
   0x4   :  { %s33_s10 = sshll.u32 %s1808_s30, 4  ;;  %p1669_p0 = scmp.ne.s32.totalorder %s2005_s1, %s1668_s13  ;;  %s34_s10 = int_to_ptr.vmem [resolvable:$true] %s33_s10 }
   0x5   :  { %p1672_p1 = scmp.lt.u32.totalorder %s1668_s13, %s2005_s1 }
   0x7   :  { %p1674_p2 = pnand %p1672_p1, %p1669_p0 }
   0x9   :  { %1677 = shalt.err (!%p1674_p2)
}
   0xa   :  { %s1678_s18 = scalar_lea.vmem %s34_s10, 9216  ;;  %p1683_p4 = scmp.lt.s32.totalorder %s34_s10, %s34_s10 }
   0xb   :  { %p1679_p3 = scmp.ne.s32.totalorder %s34_s10, %s1678_s18  ;;  %p1684_p5 = scmp.lt.s32.totalorder %s1678_s18, %s1678_s18 }
   0xd   :  { %p1685_p6 = por %p1684_p5, %p1683_p4 }
   0xf   :  { %p1686_p7 = pnand %p1685_p6, %p1679_p3 }
  0x11   :  { %1689 = shalt.err (!%p1686_p7)
}
  0x12   :  { %s1809_s19 = smov 64   ;;  %s1810_s20 = smov 4  }
  0x13   :  { %39 = dma.hbm_to_vmem [thread:$0]  %s2005_s1, 9216, %s34_s10, [#allocation6], %s1809_s19, %s1809_s19, %s1810_s20  }
  0x14   :  { %s1811_s23 = smov [#allocation8]   ;;  %s1812_s25 = smov [#allocation2]  }
  0x15   :  { %s61_s24 = sshll.u32 %s1811_s23, 4  ;;  %s24_s26 = sshll.u32 %s1812_s25, 4  ;;  %s62_s24 = int_to_ptr.vmem [resolvable:$true] %s61_s24  ;;  %s25_s26 = int_to_ptr.vmem [resolvable:$true] %s24_s26 }
  0x16   :  { %s1690_s29 = scalar_lea.hbm %s2009_s5, 1024 }
  0x17   :  { %p1691_p8 = scmp.ne.s32.totalorder %s2009_s5, %s1690_s29  ;;  %p1694_p9 = scmp.lt.u32.totalorder %s1690_s29, %s2009_s5 }
  0x19   :  { %p1696_p10 = pnand %p1694_p9, %p1691_p8 }
  0x1b   :  { %1699 = shalt.err (!%p1696_p10)
}
  0x1c   :  { %s1700_s1 = scalar_lea.vmem %s62_s24, 1024  ;;  %p1705_p12 = scmp.lt.s32.totalorder %s62_s24, %s62_s24 }
  0x1d   :  { %p1701_p11 = scmp.ne.s32.totalorder %s62_s24, %s1700_s1  ;;  %p1706_p13 = scmp.lt.s32.totalorder %s1700_s1, %s1700_s1 }
  0x1f   :  { %p1707_p0 = por %p1706_p13, %p1705_p12 }
  0x21   :  { %p1708_p1 = pnand %p1707_p0, %p1701_p11 }
  0x23   :  { %1711 = shalt.err (!%p1708_p1)
}
  0x24   :  { %67 = dma.hbm_to_vmem [thread:$0]  %s2009_s5, 1024, %s62_s24, [#allocation9], %s1809_s19, %s1809_s19, %s1810_s20  }
  0x25   :  { %s1712_s17 = scalar_lea.hbm %s2004_s0, 1152 }
  0x26   :  { %p1713_p2 = scmp.ne.s32.totalorder %s2004_s0, %s1712_s17  ;;  %p1716_p3 = scmp.lt.u32.totalorder %s1712_s17, %s2004_s0 }
  0x28   :  { %p1718_p4 = pnand %p1716_p3, %p1713_p2 }
  0x2a   :  { %1721 = shalt.err (!%p1718_p4)
}
  0x2b   :  { %s1722_s25 = scalar_lea.vmem %s25_s26, 1152  ;;  %p1727_p6 = scmp.lt.s32.totalorder %s25_s26, %s25_s26 }
  0x2c   :  { %p1723_p5 = scmp.ne.s32.totalorder %s25_s26, %s1722_s25  ;;  %p1728_p7 = scmp.lt.s32.totalorder %s1722_s25, %s1722_s25 }
  0x2e   :  { %p1729_p8 = por %p1728_p7, %p1727_p6 }
  0x30   :  { %p1730_p9 = pnand %p1729_p8, %p1723_p5 }
  0x32   :  { %1733 = shalt.err (!%p1730_p9)
}
  0x33   :  { %27 = dma.hbm_to_vmem [thread:$0]  %s2004_s0, 1152, %s25_s26, [#allocation3]  }
  0x34   :  { %s1813_s27 = smov [#allocation7]   ;;  %s1814_s29 = smov [#allocation10]  }
  0x35   :  { %s47_s28 = sshll.u32 %s1813_s27, 4  ;;  %s75_s30 = sshll.u32 %s1814_s29, 4  ;;  %s48_s28 = int_to_ptr.vmem [resolvable:$true] %s47_s28  ;;  %s76_s30 = int_to_ptr.vmem [resolvable:$true] %s75_s30 }
  0x36   :  { %s1734_s13 = scalar_lea.hbm %s2007_s3, 1024 }
  0x37   :  { %p1735_p10 = scmp.ne.s32.totalorder %s2007_s3, %s1734_s13  ;;  %p1738_p11 = scmp.lt.u32.totalorder %s1734_s13, %s2007_s3 }
  0x39   :  { %p1740_p12 = pnand %p1738_p11, %p1735_p10 }
  0x3b   :  { %1743 = shalt.err (!%p1740_p12)
}
  0x3c   :  { %s1744_s0 = scalar_lea.vmem %s48_s28, 1024  ;;  %p1749_p0 = scmp.lt.s32.totalorder %s48_s28, %s48_s28 }
  0x3d   :  { %p1745_p13 = scmp.ne.s32.totalorder %s48_s28, %s1744_s0  ;;  %p1750_p1 = scmp.lt.s32.totalorder %s1744_s0, %s1744_s0 }
  0x3f   :  { %p1751_p2 = por %p1750_p1, %p1749_p0 }
  0x41   :  { %p1752_p3 = pnand %p1751_p2, %p1745_p13 }
  0x43   :  { %1755 = shalt.err (!%p1752_p3)
}
  0x44   :  { %53 = dma.hbm_to_vmem [thread:$0]  %s2007_s3, 1024, %s48_s28, [#allocation6], %s1809_s19, %s1809_s19, %s1810_s20  }
  0x45   :  { %s1756_s21 = scalar_lea.hbm %s2011_s7, 1024 }
  0x46   :  { %p1757_p4 = scmp.ne.s32.totalorder %s2011_s7, %s1756_s21  ;;  %p1760_p5 = scmp.lt.u32.totalorder %s1756_s21, %s2011_s7 }
  0x48   :  { %p1762_p6 = pnand %p1760_p5, %p1757_p4 }
  0x4a   :  { %1765 = shalt.err (!%p1762_p6)
}
  0x4b   :  { %s1766_s24 = scalar_lea.vmem %s76_s30, 1024  ;;  %p1771_p8 = scmp.lt.s32.totalorder %s76_s30, %s76_s30 }
  0x4c   :  { %p1767_p7 = scmp.ne.s32.totalorder %s76_s30, %s1766_s24  ;;  %p1772_p9 = scmp.lt.s32.totalorder %s1766_s24, %s1766_s24 }
  0x4e   :  { %p1773_p10 = por %p1772_p9, %p1771_p8 }
  0x50   :  { %p1774_p11 = pnand %p1773_p10, %p1767_p7 }
  0x52   :  { %1777 = shalt.err (!%p1774_p11)
}
  0x53   :  { %81 = dma.hbm_to_vmem [thread:$0]  %s2011_s7, 1024, %s76_s30, [#allocation9], %s1809_s19, %s1809_s19, %s1810_s20  }
  0x54   :  { %1800 = dma.done.wait [#allocation3], 1152  }
  0x55   :  { %1801 = vsyncadd [#allocation3], 4294966144 }
  0x56   :  { %1802 = dma.done.wait [#allocation6], 10240  }
  0x57   :  { %1803 = vsyncadd [#allocation6], 4294957056 }
  0x58   :  { %1804 = dma.done.wait [#allocation9], 2048  }
  0x59   :  { %1805 = vsyncadd [#allocation9], 4294965248  ;;  %v1572_v0 = vld [vmem:[#allocation5 + $0x40] sm:$0xff]   ;;  %v1576_v4 = vld [vmem:[#allocation5 + $0x48] sm:$0xff]   ;;  %vm1816_vm0 = vmmov 0   ;;  %s1817_s11 = smov [#allocation11]  }
  0x5a   :  { %v1573_v1 = vld [vmem:[#allocation5] sm:$0xff]   ;;  %1358 = vmatprep.subr.bf16.mxu0 %v1572_v0  ;;  %v1577_v5 = vld [vmem:[#allocation5 + $0x8] sm:$0xff]   ;;  %v1580_v8 = vld [vmem:[#allocation5 + $0x50] sm:$0xff]   ;;  %s1247_s12 = sshll.u32 %s1817_s11, 4  ;;  %s1248_s12 = int_to_ptr.vmem [resolvable:$true] %s1247_s12 }
  0x5b   :  { %v1574_v2 = vld [vmem:[#allocation5 + $0xc0] sm:$0xff]   ;;  %1359 = vmatpush3.bf16.msra.mxu0 %v1573_v1  ;;  %v1578_v6 = vld [vmem:[#allocation5 + $0xc8] sm:$0xff]   ;;  %v1581_v9 = vld [vmem:[#allocation5 + $0x10] sm:$0xff]   ;;  %p1783_p13 = scmp.lt.s32.totalorder %s1248_s12, %s1248_s12 }
  0x5c   :  { %v1575_v3 = vld [vmem:[#allocation5 + $0x80] sm:$0xff]   ;;  %1380 = vmatprep.subr.bf16.mxu1 %v1574_v2  ;;  %1360 = vmatprep.subr.bf16.mxu0 %v1576_v4  ;;  %v1579_v7 = vld [vmem:[#allocation5 + $0x88] sm:$0xff]   ;;  %v1582_v10 = vld [vmem:[#allocation5 + $0xd0] sm:$0xff]  }
  0x5d   :  { %1381 = vmatpush3.bf16.msra.mxu1 %v1575_v3  ;;  %v1583_v11 = vld [vmem:[#allocation5 + $0x90] sm:$0xff]   ;;  %v1584_v12 = vld [vmem:[#allocation5 + $0x58] sm:$0xff]   ;;  %v1588_v16 = vld [vmem:[#allocation5 + $0x60] sm:$0xff]  }
  0x5e   :  { %1382 = vmatprep.subr.bf16.mxu1 %v1578_v6  ;;  %v1585_v13 = vld [vmem:[#allocation5 + $0x18] sm:$0xff]   ;;  %v1589_v17 = vld [vmem:[#allocation5 + $0x20] sm:$0xff]   ;;  %v1592_v20 = vld [vmem:[#allocation5 + $0x68] sm:$0xff]  }
  0x5f   :  { %1361 = vmatpush3.bf16.msra.mxu0 %v1577_v5  ;;  %v1586_v14 = vld [vmem:[#allocation5 + $0xd8] sm:$0xff]   ;;  %v1590_v18 = vld [vmem:[#allocation5 + $0xe0] sm:$0xff]   ;;  %v1593_v21 = vld [vmem:[#allocation5 + $0x28] sm:$0xff]  }
  0x60   :  { %1362 = vmatprep.subr.bf16.mxu0 %v1580_v8  ;;  %v1587_v15 = vld [vmem:[#allocation5 + $0x98] sm:$0xff]   ;;  %v1591_v19 = vld [vmem:[#allocation5 + $0xa0] sm:$0xff]   ;;  %v1594_v22 = vld [vmem:[#allocation5 + $0xe8] sm:$0xff]  }
  0x61   :  { %1383 = vmatpush3.bf16.msra.mxu1 %v1579_v7  ;;  %v1595_v23 = vld [vmem:[#allocation5 + $0xa8] sm:$0xff]   ;;  %v1596_v24 = vld [vmem:[#allocation5 + $0x70] sm:$0xff]   ;;  %v1600_v28 = vld [vmem:[#allocation5 + $0x78] sm:$0xff]  }
  0x62   :  { %1384 = vmatprep.subr.bf16.mxu1 %v1582_v10  ;;  %v1597_v25 = vld [vmem:[#allocation5 + $0x30] sm:$0xff]   ;;  %v1601_v29 = vld [vmem:[#allocation5 + $0x38] sm:$0xff]   ;;  %v101_v31 = vld [vmem:[#allocation2 + $0x8] sm:$0xff] }
  0x63   :  { %1363 = vmatpush3.bf16.msra.mxu0 %v1581_v9  ;;  %v1598_v26 = vld [vmem:[#allocation5 + $0xf0] sm:$0xff]   ;;  %v1602_v30 = vld [vmem:[#allocation5 + $0xf8] sm:$0xff]   ;;  %v110_v32 = vpack.c.bf16 %v101_v31, %v101_v31  ;;  %v1604_v36 = vld [vmem:[#allocation5 + $0x140] sm:$0xff]  }
  0x64   :  { %1364 = vmatprep.subr.bf16.mxu0 %v1584_v12  ;;  %v1599_v27 = vld [vmem:[#allocation5 + $0xb0] sm:$0xff]   ;;  %v1603_v33 = vld [vmem:[#allocation5 + $0xb8] sm:$0xff]   ;;  %v1605_v39 = vld [vmem:[#allocation5 + $0x100] sm:$0xff]   ;;  %v1815_v12 = vmov 0.0  }
  0x65   :  { %1385 = vmatpush3.bf16.msra.mxu1 %v1583_v11  ;;  %v100_v34 = vld [vmem:[#allocation2] sm:$0xff]  ;;  %v103_v37 = vld [vmem:[#allocation2 + $0x18] sm:$0xff]  ;;  %733 = vmatprep.mubr.bf16.mxu0 %v110_v32  ;;  %v102_v40 = vld [vmem:[#allocation2 + $0x10] sm:$0xff] }
  0x66   :  { %1386 = vmatprep.subr.bf16.mxu1 %v1586_v14  ;;  %v109_v35 = vpack.c.bf16 %v100_v34, %v100_v34  ;;  %v112_v38 = vpack.c.bf16 %v103_v37, %v103_v37  ;;  %v111_v41 = vpack.c.bf16 %v102_v40, %v102_v40  ;;  %v1606_v42 = vld [vmem:[#allocation5 + $0x1c0] sm:$0xff]   ;;  %v1608_v44 = vld [vmem:[#allocation5 + $0x148] sm:$0xff]   ;;  %v1612_v48 = vld [vmem:[#allocation5 + $0x150] sm:$0xff]  }
  0x67   :  { %1365 = vmatpush3.bf16.msra.mxu0 %v1585_v13  ;;  %v1607_v43 = vld [vmem:[#allocation5 + $0x180] sm:$0xff]   ;;  %v1609_v45 = vld [vmem:[#allocation5 + $0x108] sm:$0xff]   ;;  %v1613_v49 = vld [vmem:[#allocation5 + $0x110] sm:$0xff]  }
  0x68   :  { %1366 = vmatprep.subr.bf16.mxu0 %v1588_v16  ;;  %773 = vmatprep.mubr.bf16.mxu1 %v112_v38  ;;  %v1610_v46 = vld [vmem:[#allocation5 + $0x1c8] sm:$0xff]   ;;  %v1614_v50 = vld [vmem:[#allocation5 + $0x1d0] sm:$0xff]   ;;  %v1616_v52 = vld [vmem:[#allocation5 + $0x158] sm:$0xff]  }
  0x69   :  { %1387 = vmatpush3.bf16.msra.mxu1 %v1587_v15  ;;  %v1611_v47 = vld [vmem:[#allocation5 + $0x188] sm:$0xff]   ;;  %v1615_v51 = vld [vmem:[#allocation5 + $0x190] sm:$0xff]   ;;  %v1617_v53 = vld [vmem:[#allocation5 + $0x118] sm:$0xff]  }
  0x6a   :  { %1388 = vmatprep.subr.bf16.mxu1 %v1590_v18  ;;  %v1618_v54 = vld [vmem:[#allocation5 + $0x1d8] sm:$0xff]   ;;  %v1620_v56 = vld [vmem:[#allocation5 + $0x160] sm:$0xff]   ;;  %v1624_v60 = vld [vmem:[#allocation5 + $0x168] sm:$0xff]  }
  0x6b   :  { %1367 = vmatpush3.bf16.msra.mxu0 %v1589_v17  ;;  %v1619_v55 = vld [vmem:[#allocation5 + $0x198] sm:$0xff]   ;;  %v1621_v57 = vld [vmem:[#allocation5 + $0x120] sm:$0xff]   ;;  %v1625_v61 = vld [vmem:[#allocation5 + $0x128] sm:$0xff]  }
  0x6c   :  { %1368 = vmatprep.subr.bf16.mxu0 %v1592_v20  ;;  %v1622_v58 = vld [vmem:[#allocation5 + $0x1e0] sm:$0xff]   ;;  %v1626_v62 = vld [vmem:[#allocation5 + $0x1e8] sm:$0xff]   ;;  %v1628_v0 = vld [vmem:[#allocation5 + $0x170] sm:$0xff]  }
  0x6d   :  { %1389 = vmatpush3.bf16.msra.mxu1 %v1591_v19  ;;  %v1623_v59 = vld [vmem:[#allocation5 + $0x1a0] sm:$0xff]   ;;  %v1627_v63 = vld [vmem:[#allocation5 + $0x1a8] sm:$0xff]   ;;  %v1629_v1 = vld [vmem:[#allocation5 + $0x130] sm:$0xff]  }
  0x6e   :  { %1390 = vmatprep.subr.bf16.mxu1 %v1594_v22  ;;  %v1630_v2 = vld [vmem:[#allocation5 + $0x1f0] sm:$0xff]   ;;  %v1632_v4 = vld [vmem:[#allocation5 + $0x178] sm:$0xff]   ;;  %v105_v7 = vld [vmem:[#allocation2 + $0x28] sm:$0xff] }
  0x6f   :  { %1369 = vmatpush3.bf16.msra.mxu0 %v1593_v21  ;;  %v1631_v3 = vld [vmem:[#allocation5 + $0x1b0] sm:$0xff]   ;;  %v1633_v5 = vld [vmem:[#allocation5 + $0x138] sm:$0xff]   ;;  %v114_v8 = vpack.c.bf16 %v105_v7, %v105_v7  ;;  %v1636_v15 = vld [vmem:[#allocation5 + $0x200] sm:$0xff]  }
  0x70   :  { %1370 = vmatprep.subr.bf16.mxu0 %v1596_v24  ;;  %v1634_v6 = vld [vmem:[#allocation5 + $0x1f8] sm:$0xff]   ;;  %v107_v13 = vld [vmem:[#allocation2 + $0x38] sm:$0xff]  ;;  %v106_v16 = vld [vmem:[#allocation2 + $0x30] sm:$0xff] }
  0x71   :  { %1391 = vmatpush3.bf16.msra.mxu1 %v1595_v23  ;;  %v1635_v9 = vld [vmem:[#allocation5 + $0x1b8] sm:$0xff]   ;;  %v116_v14 = vpack.c.bf16 %v107_v13, %v107_v13  ;;  %v115_v17 = vpack.c.bf16 %v106_v16, %v106_v16  ;;  %v1637_v18 = vld [vmem:[#allocation5 + $0x208] sm:$0xff]   ;;  %v1638_v19 = vld [vmem:[#allocation5 + $0x210] sm:$0xff]  }
  0x72   :  { %1392 = vmatprep.subr.bf16.mxu1 %v1598_v26  ;;  %v104_v10 = vld [vmem:[#allocation2 + $0x20] sm:$0xff]  ;;  %v1640_v21 = vld [vmem:[#allocation5 + $0x220] sm:$0xff]   ;;  %v1641_v22 = vld [vmem:[#allocation5 + $0x228] sm:$0xff]  }
  0x73   :  { %1371 = vmatpush3.bf16.msra.mxu0 %v1597_v25  ;;  %v113_v11 = vpack.c.bf16 %v104_v10, %v104_v10  ;;  %v1639_v20 = vld [vmem:[#allocation5 + $0x218] sm:$0xff]   ;;  %v1642_v23 = vld [vmem:[#allocation5 + $0x230] sm:$0xff]   ;;  %v1648_v31 = vld [vmem:[#allocation7 + $0x20] sm:$0xff]  }
  0x74   :  { %1372 = vmatprep.subr.bf16.mxu0 %v1600_v28  ;;  %v1643_v24 = vld [vmem:[#allocation5 + $0x238] sm:$0xff]   ;;  %v1645_v28 = vld [vmem:[#allocation7 + $0x8] sm:$0xff]   ;;  %v1654_v37 = vld [vmem:[#allocation8 + $0x10] sm:$0xff]  }
  0x75   :  { %1393 = vmatpush3.bf16.msra.mxu1 %v1599_v27  ;;  %v108_v25 = vld [vmem:[#allocation2 + $0x40] sm:$0xff]  ;;  %v1644_v27 = vld [vmem:[#allocation7] sm:$0xff]   ;;  %v1649_v32 = vld [vmem:[#allocation7 + $0x28] sm:$0xff]  }
  0x76   :  { %1394 = vmatprep.subr.bf16.mxu1 %v1602_v30  ;;  %v117_v26 = vpack.c.bf16 %v108_v25, %v108_v25  ;;  %v1647_v30 = vld [vmem:[#allocation7 + $0x18] sm:$0xff]   ;;  %v1657_v40 = vld [vmem:[#allocation8 + $0x28] sm:$0xff]   ;;  %v1664_v16 = vld [vmem:[#allocation10 + $0x20] sm:$0xff]  }
  0x77   :  { %1373 = vmatpush3.bf16.msra.mxu0 %v1601_v29  ;;  %v1646_v29 = vld [vmem:[#allocation7 + $0x10] sm:$0xff]   ;;  %v1651_v34 = vld [vmem:[#allocation7 + $0x38] sm:$0xff]   ;;  %v1661_v13 = vld [vmem:[#allocation10 + $0x8] sm:$0xff]  }
  0x78   :  { %1402 = vmatprep.subr.bf16.mxu0 %v1604_v36  ;;  %v1653_v36 = vld [vmem:[#allocation8 + $0x8] sm:$0xff]   ;;  %v1655_v38 = vld [vmem:[#allocation8 + $0x18] sm:$0xff]  }
  0x79   :  { %1395 = vmatpush3.bf16.msra.mxu1 %v1603_v33  ;;  %v1650_v33 = vld [vmem:[#allocation7 + $0x30] sm:$0xff]   ;;  %v1659_v10 = vld [vmem:[#allocation8 + $0x38] sm:$0xff]  }
  0x7a   :  { %734 = vmatmul.mubr.bf16.vlgmr.msra.gmra.mrb[0].mxu0 %v109_v35  ;;  %1424 = vmatprep.subr.bf16.mxu1 %v1606_v42  ;;  %v1652_v35 = vld [vmem:[#allocation8] sm:$0xff]   ;;  %v1258_v42 = vld [vmem:[%s2006_s2] ss:$0 sm:$0xff] }
  0x7b   :  { %1403 = vmatpush3.bf16.msra.mxu0 %v1605_v39  ;;  %813 = vmatprep.mubr.bf16.mxu0 %v114_v8  ;;  %v1656_v39 = vld [vmem:[#allocation8 + $0x20] sm:$0xff]  }
  0x7c   :  { %774 = vmatmul.mubr.bf16.vlgmr.msra.gmra.mrb[0].mxu1 %v111_v41  ;;  %1404 = vmatprep.subr.bf16.mxu0 %v1608_v44 }
  0x7d   :  { %1425 = vmatpush3.bf16.msra.mxu1 %v1607_v43  ;;  %853 = vmatprep.mubr.bf16.mxu1 %v116_v14  ;;  %v1662_v14 = vld [vmem:[#allocation10 + $0x10] sm:$0xff]  }
  0x7e   :  { %1426 = vmatprep.subr.bf16.mxu1 %v1610_v46 }
  0x7f   :  { %1405 = vmatpush3.bf16.msra.mxu0 %v1609_v45 }
  0x80   :  { %1406 = vmatprep.subr.bf16.mxu0 %v1612_v48 }
  0x81   :  { %1427 = vmatpush3.bf16.msra.mxu1 %v1611_v47 }
  0x82   :  { %1428 = vmatprep.subr.bf16.mxu1 %v1614_v50 }
  0x83   :  { %1407 = vmatpush3.bf16.msra.mxu0 %v1613_v49 }
  0x84   :  { %1408 = vmatprep.subr.bf16.mxu0 %v1616_v52 }
  0x85   :  { %1429 = vmatpush3.bf16.msra.mxu1 %v1615_v51 }
  0x86   :  { %1430 = vmatprep.subr.bf16.mxu1 %v1618_v54 }
  0x87   :  { %1409 = vmatpush3.bf16.msra.mxu0 %v1617_v53 }
  0x88   :  { %1410 = vmatprep.subr.bf16.mxu0 %v1620_v56 }
  0x89   :  { %1431 = vmatpush3.bf16.msra.mxu1 %v1619_v55 }
  0x8a   :  { %1432 = vmatprep.subr.bf16.mxu1 %v1622_v58 }
  0x8b   :  { %1411 = vmatpush3.bf16.msra.mxu0 %v1621_v57 }
  0x8c   :  { %1412 = vmatprep.subr.bf16.mxu0 %v1624_v60 }
  0x8d   :  { %1433 = vmatpush3.bf16.msra.mxu1 %v1623_v59 }
  0x8e   :  { %1434 = vmatprep.subr.bf16.mxu1 %v1626_v62 }
  0x8f   :  { %1413 = vmatpush3.bf16.msra.mxu0 %v1625_v61 }
  0x90   :  { %1414 = vmatprep.subr.bf16.mxu0 %v1628_v0 }
  0x91   :  { %1435 = vmatpush3.bf16.msra.mxu1 %v1627_v63 }
  0x92   :  { %1436 = vmatprep.subr.bf16.mxu1 %v1630_v2 }
  0x93   :  { %1415 = vmatpush3.bf16.msra.mxu0 %v1629_v1 }
  0x94   :  { %1416 = vmatprep.subr.bf16.mxu0 %v1632_v4 }
  0x95   :  { %1437 = vmatpush3.bf16.msra.mxu1 %v1631_v3 }
  0x96   :  { %1438 = vmatprep.subr.bf16.mxu1 %v1634_v6 }
  0x97   :  { %1417 = vmatpush3.bf16.msra.mxu0 %v1633_v5 }
  0x98   :  { %1482 = vmatprep.subr.bf16.mxu0 %v1815_v12 }
  0x99   :  { %1439 = vmatpush3.bf16.msra.mxu1 %v1635_v9  ;;  %v1658_v9 = vld [vmem:[#allocation8 + $0x30] sm:$0xff]  }
  0x9a   :  { %814 = vmatmul.mubr.bf16.vlgmr.msra.gmra.mrb[4].mxu0 %v113_v11  ;;  %1502 = vmatprep.subr.bf16.mxu1 %v1815_v12  ;;  %v1660_v11 = vld [vmem:[#allocation10] sm:$0xff]  }
  0x9b   :  { %1483 = vmatpush3.bf16.msra.mxu0 %v1636_v15  ;;  %1498 = vmatprep.mubr.msk.bf16.mxu0 %vm1816_vm0, %v1815_v12  ;;  %v1663_v15 = vld [vmem:[#allocation10 + $0x18] sm:$0xff]  }
  0x9c   :  { %854 = vmatmul.mubr.bf16.vlgmr.msra.gmra.mrb[4].mxu1 %v115_v17  ;;  %1484 = vmatprep.subr.bf16.mxu0 %v1815_v12  ;;  %v1665_v17 = vld [vmem:[#allocation10 + $0x28] sm:$0xff]  }
  0x9d   :  { %1518 = vmatprep.mubr.msk.bf16.mxu1 %vm1816_vm0, %v1815_v12  ;;  %1503 = vmatpush3.bf16.msra.mxu1 %v1644_v27  ;;  %v1667_v27 = vld [vmem:[#allocation10 + $0x38] sm:$0xff]  }
  0x9e   :  { %1504 = vmatprep.subr.bf16.mxu1 %v1815_v12 }
  0x9f   :  { %1485 = vmatpush3.bf16.msra.mxu0 %v1637_v18  ;;  %v1331_v18 = vld [vmem:[%s2008_s4] ss:$0 sm:$0xff] }
  0xa0   :  { %1486 = vmatprep.subr.bf16.mxu0 %v1815_v12 }
  0xa1   :  { %1505 = vmatpush3.bf16.msra.mxu1 %v1645_v28  ;;  %v1340_v28 = vld [vmem:[%s2010_s6] ss:$0 sm:$0xff]  ;;  %s1778_s6 = scalar_lea.vmem %s1248_s12, 128 }
  0xa2   :  { %1506 = vmatprep.subr.bf16.mxu1 %v1815_v12  ;;  %p1779_p12 = scmp.ne.s32.totalorder %s1248_s12, %s1778_s6  ;;  %p1784_p0 = scmp.lt.s32.totalorder %s1778_s6, %s1778_s6 }
  0xa3   :  { %1487 = vmatpush3.bf16.msra.mxu0 %v1638_v19 }
  0xa4   :  { %1488 = vmatprep.subr.bf16.mxu0 %v1815_v12  ;;  %p1785_p1 = por %p1784_p0, %p1783_p13 }
  0xa5   :  { %1507 = vmatpush3.bf16.msra.mxu1 %v1646_v29 }
  0xa6   :  { %1508 = vmatprep.subr.bf16.mxu1 %v1815_v12  ;;  %p1786_p2 = pnand %p1785_p1, %p1779_p12 }
  0xa7   :  { %1489 = vmatpush3.bf16.msra.mxu0 %v1639_v20 }
  0xa8   :  { %1490 = vmatprep.subr.bf16.mxu0 %v1815_v12 }
  0xa9   :  { %1509 = vmatpush3.bf16.msra.mxu1 %v1647_v30 }
  0xaa   :  { %1510 = vmatprep.subr.bf16.mxu1 %v1815_v12 }
  0xab   :  { %1491 = vmatpush3.bf16.msra.mxu0 %v1640_v21 }
  0xac   :  { %1492 = vmatprep.subr.bf16.mxu0 %v1815_v12 }
  0xad   :  { %1511 = vmatpush3.bf16.msra.mxu1 %v1648_v31 }
  0xae   :  { %1512 = vmatprep.subr.bf16.mxu1 %v1815_v12 }
  0xaf   :  { %1493 = vmatpush3.bf16.msra.mxu0 %v1641_v22 }
  0xb0   :  { %1494 = vmatprep.subr.bf16.mxu0 %v1815_v12 }
  0xb1   :  { %1513 = vmatpush3.bf16.msra.mxu1 %v1649_v32 }
  0xb2   :  { %1514 = vmatprep.subr.bf16.mxu1 %v1815_v12 }
  0xb3   :  { %1495 = vmatpush3.bf16.msra.mxu0 %v1642_v23 }
  0xb4   :  { %1496 = vmatprep.subr.bf16.mxu0 %v1815_v12 }
  0xb5   :  { %1515 = vmatpush3.bf16.msra.mxu1 %v1650_v33 }
  0xb6   :  { %1516 = vmatprep.subr.bf16.mxu1 %v1815_v12 }
  0xb7   :  { %1497 = vmatpush3.bf16.msra.mxu0 %v1643_v24 }
  0xb8   :  { %1522 = vmatprep.subr.bf16.mxu0 %v1815_v12 }
  0xb9   :  { %1517 = vmatpush3.bf16.msra.mxu1 %v1651_v34 }
  0xba   :  { %1499 = vmatmul.mubr.bf16.vlgmr.msra.gmra.mrb[8].mxu0 %v117_v26  ;;  %1542 = vmatprep.subr.bf16.mxu1 %v1815_v12  ;;  %v1666_v26 = vld [vmem:[#allocation10 + $0x30] sm:$0xff]  }
  0xbb   :  { %1538 = vmatprep.mubr.msk.bf16.mxu0 %vm1816_vm0, %v1815_v12  ;;  %1523 = vmatpush3.bf16.msra.mxu0 %v1652_v35 }
  0xbc   :  { %1524 = vmatprep.subr.bf16.mxu0 %v1815_v12 }
  0xbf   :  { %1525 = vmatpush3.bf16.msra.mxu0 %v1653_v36  ;;  %v1349_v36 = vld [vmem:[%s2012_s8] ss:$0 sm:$0xff] }
  0xc0   :  { %1526 = vmatprep.subr.bf16.mxu0 %v1815_v12 }
  0xc3   :  { %1527 = vmatpush3.bf16.msra.mxu0 %v1654_v37 }
  0xc4   :  { %1528 = vmatprep.subr.bf16.mxu0 %v1815_v12 }
  0xc7   :  { %1529 = vmatpush3.bf16.msra.mxu0 %v1655_v38 }
  0xc8   :  { %1530 = vmatprep.subr.bf16.mxu0 %v1815_v12 }
  0xcb   :  { %1531 = vmatpush3.bf16.msra.mxu0 %v1656_v39 }
  0xcc   :  { %1532 = vmatprep.subr.bf16.mxu0 %v1815_v12 }
  0xcf   :  { %1533 = vmatpush3.bf16.msra.mxu0 %v1657_v40 }
  0xd0   :  { %1534 = vmatprep.subr.bf16.mxu0 %v1815_v12 }
  0xd3   :  { %1535 = vmatpush3.bf16.msra.mxu0 %v1658_v9 }
  0xd4   :  { %1536 = vmatprep.subr.bf16.mxu0 %v1815_v12 }
  0xd7   :  { %1537 = vmatpush3.bf16.msra.mxu0 %v1659_v10 }
 0x14d   :  { %v1374_v41 = vpop.f32.mrb[0].mxu0 }
 0x14e   :  { %v1375_v43 = vpop.f32.mrb[1].mxu0 }
 0x14f   :  { %v1376_v44 = vadd.f32 %v1375_v43, %v1374_v41  ;;  %v1377_v45 = vpop.f32.mrb[2].mxu0  ;;  %v1396_v46 = vpop.f32.mrb[0].mxu1 }
 0x150   :  { %v1378_v47 = vpop.f32.mrb[3].mxu0  ;;  %v1397_v49 = vpop.f32.mrb[1].mxu1 }
 0x151   :  { %v736_v48 = vadd.f32 %v1376_v44, %v1258_v42  ;;  %v1398_v50 = vadd.f32 %v1397_v49, %v1396_v46  ;;  %v1399_v51 = vpop.f32.mrb[2].mxu1 }
 0x152   :  { %v1400_v52 = vpop.f32.mrb[3].mxu1 }
 0x153   :  { %v776_v53 = vadd.f32 %v1398_v50, %v736_v48 }
 0x16d   :  { %v1418_v54 = vpop.f32.mrb[4].mxu0 }
 0x16e   :  { %v1419_v55 = vpop.f32.mrb[5].mxu0 }
 0x16f   :  { %v1420_v56 = vadd.f32 %v1419_v55, %v1418_v54  ;;  %v1421_v57 = vpop.f32.mrb[6].mxu0  ;;  %v1440_v58 = vpop.f32.mrb[4].mxu1 }
 0x170   :  { %v1422_v59 = vpop.f32.mrb[7].mxu0  ;;  %v1441_v60 = vpop.f32.mrb[5].mxu1 }
 0x171   :  { %v816_v61 = vadd.f32 %v1420_v56, %v776_v53  ;;  %v1442_v62 = vadd.f32 %v1441_v60, %v1440_v58  ;;  %v1443_v63 = vpop.f32.mrb[6].mxu1 }
 0x172   :  { %v1444_v0 = vpop.f32.mrb[7].mxu1 }
 0x173   :  { %v856_v1 = vadd.f32 %v1442_v62, %v816_v61 }
 0x18d   :  { %v895_v2 = vpop.f32.mrb[8].mxu0 }
 0x18e   :  { %v896_v3 = vadd.f32 %v895_v2, %v856_v1  ;;  %v1500_v4 = vpop.f32.mrb[9].mxu0 }
 0x18f   :  { %v898_v5 = vpop.f32.mrb[10].mxu0 }
 0x190   :  { %v901_v6 = vmax.f32 %v896_v3, 0.0  ;;  %v1501_v7 = vpop.f32.mrb[11].mxu0 }
 0x192   :  { %v902_v8 = vpack.c.bf16 %v901_v6, %v901_v6 }
 0x194   :  { %1519 = vmatmul.mubr.bf16.vlgmr.msra.gmra.mrb[8].mxu1 %v902_v8 }
 0x195   :  { %1558 = vmatprep.mubr.msk.bf16.mxu1 %vm1816_vm0, %v1815_v12  ;;  %1543 = vmatpush3.bf16.msra.mxu1 %v1660_v11 }
 0x196   :  { %1544 = vmatprep.subr.bf16.mxu1 %v1815_v12 }
 0x199   :  { %1545 = vmatpush3.bf16.msra.mxu1 %v1661_v13 }
 0x19a   :  { %1546 = vmatprep.subr.bf16.mxu1 %v1815_v12 }
 0x19d   :  { %1547 = vmatpush3.bf16.msra.mxu1 %v1662_v14 }
 0x19e   :  { %1548 = vmatprep.subr.bf16.mxu1 %v1815_v12 }
 0x1a1   :  { %1549 = vmatpush3.bf16.msra.mxu1 %v1663_v15 }
 0x1a2   :  { %1550 = vmatprep.subr.bf16.mxu1 %v1815_v12 }
 0x1a5   :  { %1551 = vmatpush3.bf16.msra.mxu1 %v1664_v16 }
 0x1a6   :  { %1552 = vmatprep.subr.bf16.mxu1 %v1815_v12 }
 0x1a9   :  { %1553 = vmatpush3.bf16.msra.mxu1 %v1665_v17 }
 0x1aa   :  { %1554 = vmatprep.subr.bf16.mxu1 %v1815_v12 }
 0x1ad   :  { %1555 = vmatpush3.bf16.msra.mxu1 %v1666_v26 }
 0x1ae   :  { %1556 = vmatprep.subr.bf16.mxu1 %v1815_v12 }
 0x1b1   :  { %1557 = vmatpush3.bf16.msra.mxu1 %v1667_v27 }
 0x267   :  { %v1008_v19 = vpop.f32.mrb[8].mxu1 }
 0x268   :  { %v1009_v20 = vadd.f32 %v1331_v18, %v1008_v19  ;;  %v1520_v21 = vpop.f32.mrb[9].mxu1 }
 0x269   :  { %v1011_v22 = vpop.f32.mrb[10].mxu1 }
 0x26a   :  { %v1014_v23 = vmax.f32 %v1009_v20, 0.0  ;;  %v1521_v24 = vpop.f32.mrb[11].mxu1 }
 0x26c   :  { %v1015_v25 = vpack.c.bf16 %v1014_v23, %v1014_v23 }
 0x26e   :  { %1539 = vmatmul.mubr.bf16.vlgmr.msra.gmra.mrb[12].mxu0 %v1015_v25 }
 0x341   :  { %v1121_v29 = vpop.f32.mrb[12].mxu0 }
 0x342   :  { %v1122_v30 = vadd.f32 %v1340_v28, %v1121_v29  ;;  %v1540_v31 = vpop.f32.mrb[13].mxu0 }
 0x343   :  { %v1124_v32 = vpop.f32.mrb[14].mxu0 }
 0x344   :  { %v1127_v33 = vmax.f32 %v1122_v30, 0.0  ;;  %v1541_v34 = vpop.f32.mrb[15].mxu0 }
 0x346   :  { %v1128_v35 = vpack.c.bf16 %v1127_v33, %v1127_v33 }
 0x348   :  { %1559 = vmatmul.mubr.bf16.vlgmr.msra.gmra.mrb[12].mxu1 %v1128_v35 }
 0x41b   :  { %v1234_v12 = vpop.f32.mrb[12].mxu1 }
 0x41c   :  { %v1235_v37 = vadd.f32 %v1349_v36, %v1234_v12  ;;  %v1560_v38 = vpop.f32.mrb[13].mxu1 }
 0x41d   :  { %v1237_v39 = vpop.f32.mrb[14].mxu1 }
 0x41e   :  { %1240 = vst [vmem:[#allocation11] sm:$0xff] %v1235_v37  ;;  %v1561_v40 = vpop.f32.mrb[15].mxu1 }
 0x41f   :  { %1789 = shalt.err (!%p1786_p2)
}
 0x420   :  { %s1790_s8 = scalar_lea.hbm %s2013_s9, 128 }
 0x421   :  { %p1791_p3 = scmp.ne.s32.totalorder %s2013_s9, %s1790_s8  ;;  %p1794_p4 = scmp.lt.u32.totalorder %s1790_s8, %s2013_s9 }
 0x423   :  { %p1796_p5 = pnand %p1794_p4, %p1791_p3 }
 0x425   :  { %1799 = shalt.err (!%p1796_p5)
}
 0x426   :  { %1250 = dma.vmem_to_hbm [thread:$0]  %s1248_s12, 128, %s2013_s9, [#allocation4]  }
 0x427   :  { %1806 = dma.done.wait [#allocation4], 128  }
 0x428   :  { %1807 = vsyncadd [#allocation4], 4294967168 }
 0x429   :  { %1254 = vsyncpa [#allocation3], 1 }
 0x42a   :  { %1255 = vsyncpa [#allocation6], 1 }
 0x42b   :  { %1256 = vsyncpa [#allocation9], 1 }
 0x42c   :  { %1257 = vsyncpa [#allocation4], 1 }

</bundles_post_ra>
